<compile_context>
chip_gen: v5e
topology: v5e:2x2
jax: 0.10.0
libtpu: 0.0.40
codegen_flags: <defaults>
</compile_context>

<pallas_src>
import functools

import jax
import jax.numpy as jnp
from jax.experimental import pallas as pl
from jax.experimental.pallas import tpu as pltpu


def _round_up(a: int, b: int) -> int:
    return (a + b - 1) // b * b


# ----------------------------------------------------------------------------
# Fused CCC-loss kernel (grid over batch tiles, reduction axis = "arbitrary")
# ----------------------------------------------------------------------------
def _ccc_kernel(x_ref, y_ref, bins_ref, o_ref,
                sx_ref, sy_ref, sxx_ref, syy_ref, sxy_ref,
                *, n_valid: int, use_softmax: bool):
    i = pl.program_id(0)
    tb = x_ref.shape[0]

    @pl.when(i == 0)
    def _init():
        sx_ref[...] = jnp.zeros_like(sx_ref)
        sy_ref[...] = jnp.zeros_like(sy_ref)
        sxx_ref[...] = jnp.zeros_like(sxx_ref)
        syy_ref[...] = jnp.zeros_like(syy_ref)
        sxy_ref[...] = jnp.zeros_like(sxy_ref)

    # Mask rows past the true batch size (wrapper zero-pads to a tile multiple).
    row = i * tb + jax.lax.broadcasted_iota(jnp.int32, (tb, 1), 0)
    valid = row < n_valid

    if use_softmax:
        logits = x_ref[...]                                      # (tb, D) f32
        m = jnp.max(logits, axis=-1, keepdims=True)
        e = jnp.exp(logits - m)                                  # EUP
        p = e / jnp.sum(e, axis=-1, keepdims=True)
        xv = jnp.sum(p * bins_ref[...], axis=-1, keepdims=True)  # (tb, 1)
    else:
        xv = x_ref[...]                                          # (tb, 1)

    xv = jnp.where(valid, xv, 0.0)
    yv = jnp.where(valid, y_ref[...], 0.0)

    # Raw-moment partial sums, accumulated across grid steps.
    sx_ref[...] += jnp.sum(xv, keepdims=True)
    sy_ref[...] += jnp.sum(yv, keepdims=True)
    sxx_ref[...] += jnp.sum(xv * xv, keepdims=True)
    syy_ref[...] += jnp.sum(yv * yv, keepdims=True)
    sxy_ref[...] += jnp.sum(xv * yv, keepdims=True)

    @pl.when(i == pl.num_programs(0) - 1)
    def _finalize():
        n = float(n_valid)
        sx, sy = sx_ref[...], sy_ref[...]
        sxx, syy, sxy = sxx_ref[...], syy_ref[...], sxy_ref[...]
        x_m = sx / n
        y_m = sy / n
        cxx = sxx - sx * x_m            # sum((x - mean(x))^2)
        cyy = syy - sy * y_m            # sum((y - mean(y))^2)
        cxy = sxy - sx * y_m            # sum((x - mx) * (y - my))
        rho = cxy / (jnp.sqrt(cxx) * jnp.sqrt(cyy))
        x_var = cxx / (n - 1.0)         # torch.std -> unbiased (N-1)
        y_var = cyy / (n - 1.0)
        x_s = jnp.sqrt(x_var)
        y_s = jnp.sqrt(y_var)
        ccc = 2.0 * rho * x_s * y_s / (x_var + y_var + (x_m - y_m) * (x_m - y_m))
        o_ref[...] = (1.0 - ccc).astype(o_ref.dtype)


# ----------------------------------------------------------------------------
# Wrapper: CCCLoss(digitize_num, range=[-1,1]).forward(x, y)
# ----------------------------------------------------------------------------
def ccc_loss(x, y, bins=None, *, digitize_num, block_b=512):
    """Fully fused Pallas CCC loss.  Returns a scalar float32 loss."""
    # NOTE: digitize_num == 0 is not a usable configuration in the original
    # PyTorch module either (self.bins would be undefined in forward()).
    y = jnp.asarray(y, jnp.float32).reshape(-1)
    use_softmax = digitize_num != 1
    if use_softmax:
        x = jnp.asarray(x, jnp.float32)
        b, d = x.shape
        bins2 = jnp.asarray(bins, jnp.float32).reshape(1, d)
    else:
        x = jnp.asarray(x, jnp.float32).reshape(-1, 1)   # x.view(-1)
        b, d = x.shape
        bins2 = jnp.zeros((1, 1), jnp.float32)           # unused placeholder
    assert y.shape[0] == b
    y2 = y.reshape(b, 1)

    tb = min(_round_up(block_b, 8), _round_up(b, 8))
    b_pad = _round_up(b, tb)
    if b_pad != b:                                       # zero-pad to tile multiple
        x = jnp.pad(x, ((0, b_pad - b), (0, 0)))
        y2 = jnp.pad(y2, ((0, b_pad - b), (0, 0)))
    n_blocks = b_pad // tb

    kernel = functools.partial(_ccc_kernel, n_valid=b, use_softmax=use_softmax)
    cost = pl.CostEstimate(
        flops=int(b * (8 * d + 16)),
        transcendentals=int(b * d if use_softmax else 0),
        bytes_accessed=int(4 * (b_pad * d + b_pad + d + 1)),
    )

    out = pl.pallas_call(
        kernel,
        out_shape=jax.ShapeDtypeStruct((1, 1), jnp.float32),
        grid=(n_blocks,),
        in_specs=[
            pl.BlockSpec((tb, d), lambda i: (i, 0)),     # x tile (pipelined)
            pl.BlockSpec((tb, 1), lambda i: (i, 0)),     # y tile (pipelined)
            pl.BlockSpec((1, d), lambda i: (0, 0)),      # bins stay VMEM-resident
        ],
        out_specs=pl.BlockSpec((1, 1), lambda i: (0, 0)),
        scratch_shapes=[pltpu.VMEM((1, 1), jnp.float32) for _ in range(5)],
        compiler_params=pltpu.CompilerParams(
            dimension_semantics=("arbitrary",)),         # reduction axis
        cost_estimate=cost,
    )(x, y2, bins2)
    return out[0, 0]


# ----------------------------------------------------------------------------
# Pure-JAX reference (mirrors the PyTorch forward exactly)
# ----------------------------------------------------------------------------
def ccc_loss_ref(x, y, bins, digitize_num):
    y = jnp.reshape(y, (-1,))
    if digitize_num != 1:
        p = jax.nn.softmax(x, axis=-1)
        x = jnp.sum(jnp.reshape(bins, (1, -1)) * p, axis=-1)
    x = jnp.reshape(x, (-1,))
    vx = x - jnp.mean(x)
    vy = y - jnp.mean(y)
    rho = jnp.sum(vx * vy) / (jnp.sqrt(jnp.sum(vx ** 2)) * jnp.sqrt(jnp.sum(vy ** 2)))
    x_m, y_m = jnp.mean(x), jnp.mean(y)
    x_s, y_s = jnp.std(x, ddof=1), jnp.std(y, ddof=1)
    ccc = 2.0 * rho * x_s * y_s / (x_s ** 2 + y_s ** 2 + (x_m - y_m) ** 2)
    return 1.0 - ccc


if __name__ == "__main__":
    key = jax.random.PRNGKey(0)
    k1, k2, k3 = jax.random.split(key, 3)

    # Typical CCCLoss configuration: digitized predictions over 20 bins in [-1, 1].
    digitize_num = 20
    B = 200                                 # deliberately NOT a multiple of the tile
    x = jax.random.normal(k1, (B, digitize_num), jnp.float32)
    y = jax.random.uniform(k2, (B,), jnp.float32, minval=-1.0, maxval=1.0)
    bins = jnp.linspace(-1.0, 1.0, digitize_num, dtype=jnp.float32)

    # block_b=64 -> grid of 4 tiles, exercising masking + accumulation + finalize.
    loss = jax.block_until_ready(ccc_loss(x, y, bins=bins,
                                          digitize_num=digitize_num, block_b=64))
    ref = ccc_loss_ref(x, y, bins, digitize_num)
    assert loss.shape == ()
    assert jnp.allclose(loss, ref, atol=1e-4, rtol=1e-4), (loss, ref)

    # digitize_num == 1 path (x is already a continuous prediction per sample).
    x1 = jax.random.uniform(k3, (B,), jnp.float32, minval=-1.0, maxval=1.0)
    loss1 = jax.block_until_ready(ccc_loss(x1, y, digitize_num=1, block_b=64))
    ref1 = ccc_loss_ref(x1, y, None, 1)
    assert jnp.allclose(loss1, ref1, atol=1e-4, rtol=1e-4), (loss1, ref1)

    print("KERNEL_OK")
</pallas_src>

<mosaic_0001>
module attributes {stable_mosaic.version = 11 : i64} {
  func.func @_ccc_kernel(%arg0: i32, %arg1: memref<64x20xf32, #tpu.memory_space<vmem>>, %arg2: memref<64x1xf32, #tpu.memory_space<vmem>>, %arg3: memref<1x20xf32, #tpu.memory_space<vmem>>, %arg4: memref<1x1xf32, #tpu.memory_space<vmem>>, %arg5: memref<1x1xf32, #tpu.memory_space<vmem>>, %arg6: memref<1x1xf32, #tpu.memory_space<vmem>>, %arg7: memref<1x1xf32, #tpu.memory_space<vmem>>, %arg8: memref<1x1xf32, #tpu.memory_space<vmem>>, %arg9: memref<1x1xf32, #tpu.memory_space<vmem>>) attributes {dimension_semantics = [#tpu.dimension_semantics<arbitrary>], iteration_bounds = array<i64: 4>, scalar_prefetch = 0 : i64, scratch_operands = 5 : i64, tpu.core_type = #tpu.core_type<tc>, window_params = [{transform_indices = @transform_0, window_bounds = array<i64: 64, 20>}, {transform_indices = @transform_1, window_bounds = array<i64: 64, 1>}, {pipeline_mode = #tpu.pipeline_mode<synchronous>, transform_indices = @transform_2, window_bounds = array<i64: 1, 20>}, {pipeline_mode = #tpu.pipeline_mode<synchronous>, transform_indices = @transform_3, window_bounds = array<i64: 1, 1>}]} {
    %c0_i32 = arith.constant 0 : i32
    %0 = arith.cmpi eq, %arg0, %c0_i32 : i32
    %1 = arith.extui %0 : i1 to i32
    %c0_i32_0 = arith.constant 0 : i32
    %2 = arith.cmpi ne, %1, %c0_i32_0 : i32
    scf.if %2 {
      %cst_36 = arith.constant 0.000000e+00 : f32
      %75 = vector.broadcast %cst_36 : f32 to vector<1x1xf32>
      %c0_37 = arith.constant 0 : index
      %c0_38 = arith.constant 0 : index
      %76 = vector.load %arg5[%c0_37, %c0_38] : memref<1x1xf32, #tpu.memory_space<vmem>>, vector<1x1xf32>
      tpu.vector_store %arg5[%c0_37, %c0_38], %75 {strides = array<i32>} : memref<1x1xf32, #tpu.memory_space<vmem>>, vector<1x1xf32>,
      %cst_39 = arith.constant 0.000000e+00 : f32
      %77 = vector.broadcast %cst_39 : f32 to vector<1x1xf32>
      %c0_40 = arith.constant 0 : index
      %c0_41 = arith.constant 0 : index
      %78 = vector.load %arg6[%c0_40, %c0_41] : memref<1x1xf32, #tpu.memory_space<vmem>>, vector<1x1xf32>
      tpu.vector_store %arg6[%c0_40, %c0_41], %77 {strides = array<i32>} : memref<1x1xf32, #tpu.memory_space<vmem>>, vector<1x1xf32>,
      %cst_42 = arith.constant 0.000000e+00 : f32
      %79 = vector.broadcast %cst_42 : f32 to vector<1x1xf32>
      %c0_43 = arith.constant 0 : index
      %c0_44 = arith.constant 0 : index
      %80 = vector.load %arg7[%c0_43, %c0_44] : memref<1x1xf32, #tpu.memory_space<vmem>>, vector<1x1xf32>
      tpu.vector_store %arg7[%c0_43, %c0_44], %79 {strides = array<i32>} : memref<1x1xf32, #tpu.memory_space<vmem>>, vector<1x1xf32>,
      %cst_45 = arith.constant 0.000000e+00 : f32
      %81 = vector.broadcast %cst_45 : f32 to vector<1x1xf32>
      %c0_46 = arith.constant 0 : index
      %c0_47 = arith.constant 0 : index
      %82 = vector.load %arg8[%c0_46, %c0_47] : memref<1x1xf32, #tpu.memory_space<vmem>>, vector<1x1xf32>
      tpu.vector_store %arg8[%c0_46, %c0_47], %81 {strides = array<i32>} : memref<1x1xf32, #tpu.memory_space<vmem>>, vector<1x1xf32>,
      %cst_48 = arith.constant 0.000000e+00 : f32
      %83 = vector.broadcast %cst_48 : f32 to vector<1x1xf32>
      %c0_49 = arith.constant 0 : index
      %c0_50 = arith.constant 0 : index
      %84 = vector.load %arg9[%c0_49, %c0_50] : memref<1x1xf32, #tpu.memory_space<vmem>>, vector<1x1xf32>
      tpu.vector_store %arg9[%c0_49, %c0_50], %83 {strides = array<i32>} : memref<1x1xf32, #tpu.memory_space<vmem>>, vector<1x1xf32>,
    } else {
    }
    %c64_i32 = arith.constant 64 : i32
    %3 = arith.muli %arg0, %c64_i32 : i32
    %4 = tpu.iota {dimensions = array<i32: 0>} : vector<64x1xi32>
    %5 = vector.broadcast %3 : i32 to vector<64x1xi32>
    %6 = arith.addi %5, %4 : vector<64x1xi32>
    %c200_i32 = arith.constant 200 : i32
    %7 = vector.broadcast %c200_i32 : i32 to vector<64x1xi32>
    %8 = arith.cmpi slt, %6, %7 : vector<64x1xi32>
    %c0 = arith.constant 0 : index
    %c0_1 = arith.constant 0 : index
    %9 = vector.load %arg1[%c0, %c0_1] : memref<64x20xf32, #tpu.memory_space<vmem>>, vector<64x20xf32>
    %cst = arith.constant dense<0xFF800000> : vector<64xf32>
    %10 = vector.multi_reduction <maximumf>, %9, %cst [1] : vector<64x20xf32> to vector<64xf32>
    %11 = vector.shape_cast %10 : vector<64xf32> to vector<64x1xf32>
    %12 = vector.broadcast %11 : vector<64x1xf32> to vector<64x20xf32>
    %13 = arith.subf %9, %12 : vector<64x20xf32>
    %14 = math.exp %13 : vector<64x20xf32>
    %cst_2 = arith.constant dense<0.000000e+00> : vector<64xf32>
    %15 = vector.multi_reduction <add>, %14, %cst_2 [1] : vector<64x20xf32> to vector<64xf32>
    %16 = vector.shape_cast %15 : vector<64xf32> to vector<64x1xf32>
    %17 = vector.broadcast %16 : vector<64x1xf32> to vector<64x20xf32>
    %18 = arith.divf %14, %17 : vector<64x20xf32>
    %c0_3 = arith.constant 0 : index
    %c0_4 = arith.constant 0 : index
    %19 = vector.load %arg3[%c0_3, %c0_4] : memref<1x20xf32, #tpu.memory_space<vmem>>, vector<1x20xf32>
    %20 = vector.broadcast %19 : vector<1x20xf32> to vector<64x20xf32>
    %21 = arith.mulf %18, %20 : vector<64x20xf32>
    %cst_5 = arith.constant dense<0.000000e+00> : vector<64xf32>
    %22 = vector.multi_reduction <add>, %21, %cst_5 [1] : vector<64x20xf32> to vector<64xf32>
    %23 = vector.shape_cast %22 : vector<64xf32> to vector<64x1xf32>
    %cst_6 = arith.constant 0.000000e+00 : f32
    %24 = vector.broadcast %cst_6 : f32 to vector<64x1xf32>
    %25 = arith.select %8, %23, %24 : vector<64x1xi1>, vector<64x1xf32>
    %c0_7 = arith.constant 0 : index
    %c0_8 = arith.constant 0 : index
    %26 = vector.load %arg2[%c0_7, %c0_8] : memref<64x1xf32, #tpu.memory_space<vmem>>, vector<64x1xf32>
    %cst_9 = arith.constant 0.000000e+00 : f32
    %27 = vector.broadcast %cst_9 : f32 to vector<64x1xf32>
    %28 = arith.select %8, %26, %27 : vector<64x1xi1>, vector<64x1xf32>
    %c0_10 = arith.constant 0 : index
    %c0_11 = arith.constant 0 : index
    %29 = vector.load %arg5[%c0_10, %c0_11] : memref<1x1xf32, #tpu.memory_space<vmem>>, vector<1x1xf32>
    %30 = vector.shape_cast %25 : vector<64x1xf32> to vector<1x64x1xf32>
    %cst_12 = arith.constant dense<0.000000e+00> : vector<1xf32>
    %31 = vector.multi_reduction <add>, %30, %cst_12 [1, 2] : vector<1x64x1xf32> to vector<1xf32>
    %32 = vector.shape_cast %31 : vector<1xf32> to vector<1x1x1xf32>
    %33 = vector.extract %32[0, 0, 0] : f32 from vector<1x1x1xf32>
    %34 = vector.broadcast %33 : f32 to vector<1x1xf32>
    %35 = arith.addf %29, %34 : vector<1x1xf32>
    %c0_13 = arith.constant 0 : index
    %c0_14 = arith.constant 0 : index
    %36 = vector.load %arg5[%c0_13, %c0_14] : memref<1x1xf32, #tpu.memory_space<vmem>>, vector<1x1xf32>
    tpu.vector_store %arg5[%c0_13, %c0_14], %35 {strides = array<i32>} : memref<1x1xf32, #tpu.memory_space<vmem>>, vector<1x1xf32>,
    %c0_15 = arith.constant 0 : index
    %c0_16 = arith.constant 0 : index
    %37 = vector.load %arg6[%c0_15, %c0_16] : memref<1x1xf32, #tpu.memory_space<vmem>>, vector<1x1xf32>
    %38 = vector.shape_cast %28 : vector<64x1xf32> to vector<1x64x1xf32>
    %cst_17 = arith.constant dense<0.000000e+00> : vector<1xf32>
    %39 = vector.multi_reduction <add>, %38, %cst_17 [1, 2] : vector<1x64x1xf32> to vector<1xf32>
    %40 = vector.shape_cast %39 : vector<1xf32> to vector<1x1x1xf32>
    %41 = vector.extract %40[0, 0, 0] : f32 from vector<1x1x1xf32>
    %42 = vector.broadcast %41 : f32 to vector<1x1xf32>
    %43 = arith.addf %37, %42 : vector<1x1xf32>
    %c0_18 = arith.constant 0 : index
    %c0_19 = arith.constant 0 : index
    %44 = vector.load %arg6[%c0_18, %c0_19] : memref<1x1xf32, #tpu.memory_space<vmem>>, vector<1x1xf32>
    tpu.vector_store %arg6[%c0_18, %c0_19], %43 {strides = array<i32>} : memref<1x1xf32, #tpu.memory_space<vmem>>, vector<1x1xf32>,
    %c0_20 = arith.constant 0 : index
    %c0_21 = arith.constant 0 : index
    %45 = vector.load %arg7[%c0_20, %c0_21] : memref<1x1xf32, #tpu.memory_space<vmem>>, vector<1x1xf32>
    %46 = arith.mulf %25, %25 : vector<64x1xf32>
    %47 = vector.shape_cast %46 : vector<64x1xf32> to vector<1x64x1xf32>
    %cst_22 = arith.constant dense<0.000000e+00> : vector<1xf32>
    %48 = vector.multi_reduction <add>, %47, %cst_22 [1, 2] : vector<1x64x1xf32> to vector<1xf32>
    %49 = vector.shape_cast %48 : vector<1xf32> to vector<1x1x1xf32>
    %50 = vector.extract %49[0, 0, 0] : f32 from vector<1x1x1xf32>
    %51 = vector.broadcast %50 : f32 to vector<1x1xf32>
    %52 = arith.addf %45, %51 : vector<1x1xf32>
    %c0_23 = arith.constant 0 : index
    %c0_24 = arith.constant 0 : index
    %53 = vector.load %arg7[%c0_23, %c0_24] : memref<1x1xf32, #tpu.memory_space<vmem>>, vector<1x1xf32>
    tpu.vector_store %arg7[%c0_23, %c0_24], %52 {strides = array<i32>} : memref<1x1xf32, #tpu.memory_space<vmem>>, vector<1x1xf32>,
    %c0_25 = arith.constant 0 : index
    %c0_26 = arith.constant 0 : index
    %54 = vector.load %arg8[%c0_25, %c0_26] : memref<1x1xf32, #tpu.memory_space<vmem>>, vector<1x1xf32>
    %55 = arith.mulf %28, %28 : vector<64x1xf32>
    %56 = vector.shape_cast %55 : vector<64x1xf32> to vector<1x64x1xf32>
    %cst_27 = arith.constant dense<0.000000e+00> : vector<1xf32>
    %57 = vector.multi_reduction <add>, %56, %cst_27 [1, 2] : vector<1x64x1xf32> to vector<1xf32>
    %58 = vector.shape_cast %57 : vector<1xf32> to vector<1x1x1xf32>
    %59 = vector.extract %58[0, 0, 0] : f32 from vector<1x1x1xf32>
    %60 = vector.broadcast %59 : f32 to vector<1x1xf32>
    %61 = arith.addf %54, %60 : vector<1x1xf32>
    %c0_28 = arith.constant 0 : index
    %c0_29 = arith.constant 0 : index
    %62 = vector.load %arg8[%c0_28, %c0_29] : memref<1x1xf32, #tpu.memory_space<vmem>>, vector<1x1xf32>
    tpu.vector_store %arg8[%c0_28, %c0_29], %61 {strides = array<i32>} : memref<1x1xf32, #tpu.memory_space<vmem>>, vector<1x1xf32>,
    %c0_30 = arith.constant 0 : index
    %c0_31 = arith.constant 0 : index
    %63 = vector.load %arg9[%c0_30, %c0_31] : memref<1x1xf32, #tpu.memory_space<vmem>>, vector<1x1xf32>
    %64 = arith.mulf %25, %28 : vector<64x1xf32>
    %65 = vector.shape_cast %64 : vector<64x1xf32> to vector<1x64x1xf32>
    %cst_32 = arith.constant dense<0.000000e+00> : vector<1xf32>
    %66 = vector.multi_reduction <add>, %65, %cst_32 [1, 2] : vector<1x64x1xf32> to vector<1xf32>
    %67 = vector.shape_cast %66 : vector<1xf32> to vector<1x1x1xf32>
    %68 = vector.extract %67[0, 0, 0] : f32 from vector<1x1x1xf32>
    %69 = vector.broadcast %68 : f32 to vector<1x1xf32>
    %70 = arith.addf %63, %69 : vector<1x1xf32>
    %c0_33 = arith.constant 0 : index
    %c0_34 = arith.constant 0 : index
    %71 = vector.load %arg9[%c0_33, %c0_34] : memref<1x1xf32, #tpu.memory_space<vmem>>, vector<1x1xf32>
    tpu.vector_store %arg9[%c0_33, %c0_34], %70 {strides = array<i32>} : memref<1x1xf32, #tpu.memory_space<vmem>>, vector<1x1xf32>,
    %c3_i32 = arith.constant 3 : i32
    %72 = arith.cmpi eq, %arg0, %c3_i32 : i32
    %73 = arith.extui %72 : i1 to i32
    %c0_i32_35 = arith.constant 0 : i32
    %74 = arith.cmpi ne, %73, %c0_i32_35 : i32
    scf.if %74 {
      %c0_36 = arith.constant 0 : index
      %c0_37 = arith.constant 0 : index
      %75 = vector.load %arg5[%c0_36, %c0_37] : memref<1x1xf32, #tpu.memory_space<vmem>>, vector<1x1xf32>
      %c0_38 = arith.constant 0 : index
      %c0_39 = arith.constant 0 : index
      %76 = vector.load %arg6[%c0_38, %c0_39] : memref<1x1xf32, #tpu.memory_space<vmem>>, vector<1x1xf32>
      %c0_40 = arith.constant 0 : index
      %c0_41 = arith.constant 0 : index
      %77 = vector.load %arg7[%c0_40, %c0_41] : memref<1x1xf32, #tpu.memory_space<vmem>>, vector<1x1xf32>
      %c0_42 = arith.constant 0 : index
      %c0_43 = arith.constant 0 : index
      %78 = vector.load %arg8[%c0_42, %c0_43] : memref<1x1xf32, #tpu.memory_space<vmem>>, vector<1x1xf32>
      %c0_44 = arith.constant 0 : index
      %c0_45 = arith.constant 0 : index
      %79 = vector.load %arg9[%c0_44, %c0_45] : memref<1x1xf32, #tpu.memory_space<vmem>>, vector<1x1xf32>
      %cst_46 = arith.constant 2.000000e+02 : f32
      %80 = vector.broadcast %cst_46 : f32 to vector<1x1xf32>
      %81 = arith.divf %75, %80 : vector<1x1xf32>
      %cst_47 = arith.constant 2.000000e+02 : f32
      %82 = vector.broadcast %cst_47 : f32 to vector<1x1xf32>
      %83 = arith.divf %76, %82 : vector<1x1xf32>
      %84 = arith.mulf %75, %81 : vector<1x1xf32>
      %85 = arith.subf %77, %84 : vector<1x1xf32>
      %86 = arith.mulf %76, %83 : vector<1x1xf32>
      %87 = arith.subf %78, %86 : vector<1x1xf32>
      %88 = arith.mulf %75, %83 : vector<1x1xf32>
      %89 = arith.subf %79, %88 : vector<1x1xf32>
      %90 = math.sqrt %85 : vector<1x1xf32>
      %91 = math.sqrt %87 : vector<1x1xf32>
      %92 = arith.mulf %90, %91 : vector<1x1xf32>
      %93 = arith.divf %89, %92 : vector<1x1xf32>
      %cst_48 = arith.constant 1.990000e+02 : f32
      %94 = vector.broadcast %cst_48 : f32 to vector<1x1xf32>
      %95 = arith.divf %85, %94 : vector<1x1xf32>
      %cst_49 = arith.constant 1.990000e+02 : f32
      %96 = vector.broadcast %cst_49 : f32 to vector<1x1xf32>
      %97 = arith.divf %87, %96 : vector<1x1xf32>
      %98 = math.sqrt %95 : vector<1x1xf32>
      %99 = math.sqrt %97 : vector<1x1xf32>
      %cst_50 = arith.constant 2.000000e+00 : f32
      %100 = vector.broadcast %cst_50 : f32 to vector<1x1xf32>
      %101 = arith.mulf %100, %93 : vector<1x1xf32>
      %102 = arith.mulf %101, %98 : vector<1x1xf32>
      %103 = arith.mulf %102, %99 : vector<1x1xf32>
      %104 = arith.addf %95, %97 : vector<1x1xf32>
      %105 = arith.subf %81, %83 : vector<1x1xf32>
      %106 = arith.subf %81, %83 : vector<1x1xf32>
      %107 = arith.mulf %105, %106 : vector<1x1xf32>
      %108 = arith.addf %104, %107 : vector<1x1xf32>
      %109 = arith.divf %103, %108 : vector<1x1xf32>
      %cst_51 = arith.constant 1.000000e+00 : f32
      %110 = vector.broadcast %cst_51 : f32 to vector<1x1xf32>
      %111 = arith.subf %110, %109 : vector<1x1xf32>
      %c0_52 = arith.constant 0 : index
      %c0_53 = arith.constant 0 : index
      %112 = vector.load %arg4[%c0_52, %c0_53] : memref<1x1xf32, #tpu.memory_space<vmem>>, vector<1x1xf32>
      tpu.vector_store %arg4[%c0_52, %c0_53], %111 {strides = array<i32>} : memref<1x1xf32, #tpu.memory_space<vmem>>, vector<1x1xf32>,
    } else {
    }
    return
  }
  func.func @transform_0(%arg0: i32) -> (i32, i32) {
    %c0_i32 = arith.constant 0 : i32
    %c0_i32_0 = arith.constant 0 : i32
    return %arg0, %c0_i32 : i32, i32
  }
  func.func @transform_1(%arg0: i32) -> (i32, i32) {
    %c0_i32 = arith.constant 0 : i32
    %c0_i32_0 = arith.constant 0 : i32
    return %arg0, %c0_i32 : i32, i32
  }
  func.func @transform_2(%arg0: i32) -> (i32, i32) {
    %c0_i32 = arith.constant 0 : i32
    %c0_i32_0 = arith.constant 0 : i32
    %c0_i32_1 = arith.constant 0 : i32
    return %c0_i32, %c0_i32_0 : i32, i32
  }
  func.func @transform_3(%arg0: i32) -> (i32, i32) {
    %c0_i32 = arith.constant 0 : i32
    %c0_i32_0 = arith.constant 0 : i32
    %c0_i32_1 = arith.constant 0 : i32
    return %c0_i32, %c0_i32_0 : i32, i32
  }
}

</mosaic_0001>

<bundles_post_ra>
// kernel: tpu_custom_call.1
= control target key start
LH: loop header
LB: loop body
LE: loop exit
PB: predicated region body
PF: predicated region fallthrough
CT: control target
= control target key end

     0   :  { %8 = vsyncpa [#allocation8], 0  ;;  %s982_s12 = smov 0   ;;  %s1401_s0 = inlined_call_operand.vmem [shape: f32[256,20], index: 0, kind: input, shape index: {}]   ;;  %s1402_s1 = inlined_call_operand.vmem [shape: f32[256,1], index: 1, kind: input, shape index: {}]   ;;  %s1403_s2 = inlined_call_operand.vmem [shape: f32[1,20], index: 2, kind: input, shape index: {}]   ;;  %s1404_s3 = inlined_call_operand.hbm [shape: f32[1,1], index: 3, kind: output, shape index: {}]  }
   0x1 LB: > { %s988_s13 = sadd.s32 4294967295, %s956_s12   ;;  %p829_p0 = scmp.ge.s32.totalorder %s956_s12, 1  ;;  %s956_s12 = sphi %s982_s12, %s14_s12  }
   0x2   : > { %p145_p1 = scmp.lt.s32.totalorder %s956_s12, 5 }
   0x4   : > { %p146_p2 = pnand %p829_p0, %p145_p1 }
   0x5   : > { %s830_s14 = sshll.u32 (!%p146_p2), %s988_s13, 3  ;;  %p834_p4 = scmp.ne.s32.totalorder (!%p146_p2), %s988_s13, 0 }
   0x6   : > { %149 = sbr.rel (%p146_p2) target bundleno = 709 (0x2c5), region = 32  ;;  %p170_p3 = scmp.lt.s32.totalorder (!%p146_p2), %s830_s14, 31 }
   0xb   : > { %s1426_s14 = smov (!%p170_p3, %s830_s14), 31  ;;  %184 = sbr.rel (%p834_p4) target bundleno = 22 (0x16), region = 36 }
   0xc   : > { %s831_s15 = sshll.u32 %s1426_s14, 3 }
   0xd   : > { %s996_s18 = scalar_lea.vmem %s1401_s0, %s831_s15  ;;  %s1001_s21 = scalar_lea.vmem %s1402_s1, %s831_s15 }
  0x10   : > { %vm185_vm0 = vcmask 0   ;;  %v958_v0 = vmov 0.0  }
  0x11   : > { %186 = vst.msk [vmem:[#allocation2] sm:$0x1] %vm185_vm0, %v958_v0 }
  0x12   : > { %187 = vst.msk [vmem:[#allocation3] sm:$0x1] %vm185_vm0, %v958_v0 }
  0x13   : > { %188 = vst.msk [vmem:[#allocation4] sm:$0x1] %vm185_vm0, %v958_v0 }
  0x14   : > { %189 = vst.msk [vmem:[#allocation5] sm:$0x1] %vm185_vm0, %v958_v0 }
  0x15   : > { %190 = vst.msk [vmem:[#allocation6] sm:$0x1] %vm185_vm0, %v958_v0 }
  0x16 PF: > { %v222_v1 = vld [vmem:[%s996_s18 + $0x20] sm:$0xff]  ;;  %vm226_vm1 = vcmask 162816   ;;  %v220_v2 = vld [vmem:[%s996_s18 + $0x10] sm:$0xff]  ;;  %v223_v7 = vld [vmem:[%s996_s18 + $0x28] sm:$0xff]  ;;  %s835_s24 = sshll.u32 %s988_s13, 6  ;;  %p836_p5 = scmp.ne.s32.totalorder %s988_s13, 3 }
  0x17   : > { %v218_v3 = vld [vmem:[%s996_s18] sm:$0xff]  ;;  %v239_v4 = vsel %vm226_vm1, %v222_v1, -inf  ;;  %v233_v5 = vsel %vm226_vm1, %v220_v2, -inf  ;;  %v221_v8 = vld [vmem:[%s996_s18 + $0x18] sm:$0xff]  ;;  %v219_v9 = vld [vmem:[%s996_s18 + $0x8] sm:$0xff]  ;;  %v242_v10 = vsel %vm226_vm1, %v223_v7, -inf }
  0x18   : > { %v227_v6 = vsel %vm226_vm1, %v218_v3, -inf  ;;  %240 = vmax.xlane.f32.xlu2 %v239_v4  ;;  %234 = vmax.xlane.f32.xlu1 %v233_v5  ;;  %v236_v11 = vsel %vm226_vm1, %v221_v8, -inf  ;;  %v230_v12 = vsel %vm226_vm1, %v219_v9, -inf  ;;  %v225_v13 = vld [vmem:[%s996_s18 + $0x38] sm:$0xff]  ;;  %v224_v14 = vld [vmem:[%s996_s18 + $0x30] sm:$0xff] }
  0x19   : > { %228 = vmax.xlane.f32.xlu0 %v227_v6  ;;  %v248_v15 = vsel %vm226_vm1, %v225_v13, -inf  ;;  %v245_v16 = vsel %vm226_vm1, %v224_v14, -inf }
  0x20   : > { %243 = vmax.xlane.f32.xlu2 %v242_v10  ;;  %237 = vmax.xlane.f32.xlu1 %v236_v11 }
  0x21   : > { %231 = vmax.xlane.f32.xlu0 %v230_v12 }
  0x28   : > { %249 = vmax.xlane.f32.xlu1 %v248_v15 }
  0x29   : > { %246 = vmax.xlane.f32.xlu0 %v245_v16 }
  0x8b   : > { %v241_v17 = vpop.xlane.xlu2 %240  ;;  %v235_v18 = vpop.xlane.xlu1 %234 }
  0x8c   : > { %v253_v19 = vsub.f32 %v220_v2, %v235_v18  ;;  %v229_v20 = vpop.xlane.xlu0 %228  ;;  %v255_v35 = vsub.f32 %v222_v1, %v241_v17 }
  0x8d   : > { %v251_v21 = vsub.f32 %v218_v3, %v229_v20 }
  0x8e   : > { %v263_v22 = vmul.f32 1.442695, %v253_v19  ;;  %v267_v39 = vmul.f32 1.442695, %v255_v35 }
  0x8f   : > { %v259_v23 = vmul.f32 1.442695, %v251_v21 }
  0x90   : > { %870 = vpow2.f32 %v263_v22 }
  0x91   : > { %872 = vpow2.f32 %v259_v23 }
  0x93   : > { %v244_v24 = vpop.xlane.xlu2 %243  ;;  %v238_v25 = vpop.xlane.xlu1 %237 }
  0x94   : > { %v256_v26 = vsub.f32 %v223_v7, %v244_v24  ;;  %v254_v27 = vsub.f32 %v221_v8, %v238_v25  ;;  %v232_v28 = vpop.xlane.xlu0 %231 }
  0x95   : > { %v252_v29 = vsub.f32 %v219_v9, %v232_v28 }
  0x96   : > { %v269_v30 = vmul.f32 1.442695, %v256_v26  ;;  %v265_v31 = vmul.f32 1.442695, %v254_v27  ;;  %v1020_v32 = vpop.eup %870 }
  0x97   : > { %v261_v33 = vmul.f32 1.442695, %v252_v29  ;;  %v1022_v34 = vpop.eup %872  ;;  %v281_v36 = vsel %vm226_vm1, %v1020_v32, 0.0 }
  0x98   : > { %874 = vpow2.f32 %v269_v30  ;;  %282 = vadd.xlane.f32.xlu1 %v281_v36  ;;  %v275_v37 = vsel %vm226_vm1, %v1022_v34, 0.0 }
  0x99   : > { %876 = vpow2.f32 %v265_v31  ;;  %276 = vadd.xlane.f32.xlu2 %v275_v37 }
  0x9a   : > { %878 = vpow2.f32 %v261_v33 }
  0x9b   : > { %v250_v38 = vpop.xlane.xlu1 %249  ;;  %880 = vpow2.f32 %v267_v39 }
  0x9c   : > { %v247_v40 = vpop.xlane.xlu0 %246  ;;  %v258_v43 = vsub.f32 %v225_v13, %v250_v38 }
  0x9d   : > { %v257_v41 = vsub.f32 %v224_v14, %v247_v40  ;;  %v1120_v40 = vld [vmem:[%s1403_s2] ss:$0 sm:$0xff] }
  0x9e   : > { %v1028_v42 = vpop.eup %874  ;;  %v273_v50 = vmul.f32 1.442695, %v258_v43 }
  0x9f   : > { %v1030_v44 = vpop.eup %876  ;;  %v271_v45 = vmul.f32 1.442695, %v257_v41  ;;  %v290_v46 = vsel %vm226_vm1, %v1028_v42, 0.0 }
  0xa0   : > { %v1034_v47 = vpop.eup %878  ;;  %v284_v48 = vsel %vm226_vm1, %v1030_v44, 0.0  ;;  %291 = vadd.xlane.f32.xlu1 %v290_v46 }
  0xa1   : > { %882 = vpow2.f32 %v271_v45  ;;  %v278_v49 = vsel %vm226_vm1, %v1034_v47, 0.0  ;;  %285 = vadd.xlane.f32.xlu2 %v284_v48  ;;  %v1040_v51 = vpop.eup %880 }
  0xa2   : > { %279 = vadd.xlane.f32.xlu0 %v278_v49  ;;  %884 = vpow2.f32 %v273_v50  ;;  %v287_v54 = vsel %vm226_vm1, %v1040_v51, 0.0 }
  0xa7   : > { %v1042_v52 = vpop.eup %882 }
  0xa8   : > { %v293_v53 = vsel %vm226_vm1, %v1042_v52, 0.0  ;;  %v1048_v55 = vpop.eup %884 }
  0xa9   : > { %294 = vadd.xlane.f32.xlu2 %v293_v53  ;;  %v296_v56 = vsel %vm226_vm1, %v1048_v55, 0.0 }
  0xaa   : > { %288 = vadd.xlane.f32.xlu0 %v287_v54 }
  0xb2   : > { %297 = vadd.xlane.f32.xlu0 %v296_v56 }
 0x10b   : > { %v283_v57 = vpop.xlane.xlu1 %282 }
 0x10c   : > { %886 = vrcp.f32 %v283_v57  ;;  %v277_v58 = vpop.xlane.xlu2 %276  ;;  %v340_v63 = vand.u32 2147483648, %v283_v57  ;;  %v338_v3 = vand.u32 2147483647, %v283_v57  ;;  %vm334_vm2 = vweird.f32 %v283_v57 }
 0x10d   : > { %888 = vrcp.f32 %v277_v58  ;;  %v310_v5 = vand.u32 2147483648, %v277_v58  ;;  %v308_v6 = vand.u32 2147483647, %v277_v58  ;;  %vm304_vm4 = vweird.f32 %v277_v58 }
 0x10e   : > { %v341_v10 = vor.u32 1.1754944e-38, %v340_v63  ;;  %vm1072_vm7 = vcmp.eq.f32.partialorder %v338_v3, 8.507059e+37 }
 0x10f   : > { %v311_v13 = vor.u32 1.1754944e-38, %v310_v5  ;;  %vm1068_vm6 = vcmp.eq.f32.partialorder %v308_v6, 8.507059e+37 }
 0x112   : > { %v887_v59 = vpop.eup %886 }
 0x113   : > { %v1052_v60 = vpop.eup %888  ;;  %v330_v61 = vmul.f32 %v887_v59, %v283_v57  ;;  %v1054_v62 = vpop.xlane.xlu1 %291  ;;  %vm335_vm3 = vweird.f32 %v887_v59 }
 0x114   : > { %v300_v0 = vmul.f32 %v1052_v60, %v277_v58  ;;  %890 = vrcp.f32 %v1054_v62  ;;  %v1058_v1 = vpop.xlane.xlu2 %285  ;;  %v385_v8 = vand.u32 2147483648, %v1054_v62  ;;  %vm305_vm5 = vweird.f32 %v1052_v60  ;;  %vm1078_vm8 = vmor %vm334_vm2, %vm335_vm3 }
 0x115   : > { %v1060_v2 = vpop.xlane.xlu0 %279  ;;  %v331_v4 = vsub.f32 1.0, %v330_v61  ;;  %892 = vrcp.f32 %v1058_v1  ;;  %v355_v12 = vand.u32 2147483648, %v1058_v1  ;;  %vm379_vm9 = vweird.f32 %v1054_v62  ;;  %vm1088_vm11 = vmor %vm304_vm4, %vm305_vm5 }
 0x116   : > { %v301_v7 = vsub.f32 1.0, %v300_v0  ;;  %894 = vrcp.f32 %v1060_v2  ;;  %v1083_v19 = vor.u32 1.1754944e-38, %v385_v8  ;;  %vm349_vm10 = vweird.f32 %v1058_v1 }
 0x117   : > { %v332_v9 = vmul.f32 %v887_v59, %v331_v4  ;;  %v325_v24 = vand.u32 2147483648, %v1060_v2  ;;  %v353_v26 = vand.u32 2147483647, %v1058_v1  ;;  %v356_v29 = vor.u32 1.1754944e-38, %v355_v12 }
 0x118   : > { %v302_v11 = vmul.f32 %v1052_v60, %v301_v7  ;;  %v383_v35 = vand.u32 2147483647, %v1054_v62  ;;  %vm319_vm12 = vweird.f32 %v1060_v2  ;;  %v323_v41 = vand.u32 2147483647, %v1060_v2 }
 0x119   : > { %v333_v15 = vadd.f32 %v887_v59, %v332_v9  ;;  %v326_v46 = vor.u32 1.1754944e-38, %v325_v24  ;;  %vm1124_vm14 = vcmp.eq.f32.partialorder %v353_v26, 8.507059e+37 }
 0x11a   : > { %v1076_v17 = vpop.eup %890  ;;  %v303_v20 = vadd.f32 %v1052_v60, %v302_v11  ;;  %vm1140_vm2 = vcmp.eq.f32.partialorder %v383_v35, 8.507059e+37  ;;  %vm1146_vm4 = vcmp.eq.f32.partialorder %v323_v41, 8.507059e+37 }
 0x11b   : > { %v893_v21 = vpop.eup %892  ;;  %v375_v23 = vmul.f32 %v1076_v17, %v1054_v62  ;;  %v337_v25 = vsel %vm1078_vm8, %v887_v59, %v333_v15  ;;  %vm380_vm13 = vweird.f32 %v1076_v17 }
 0x11c   : > { %v1098_v27 = vpop.eup %894  ;;  %v345_v28 = vmul.f32 %v893_v21, %v1058_v1  ;;  %v1101_v30 = vpop.xlane.xlu2 %294  ;;  %v307_v33 = vsel %vm1088_vm11, %v1052_v60, %v303_v20  ;;  %v342_v38 = vsel %vm1072_vm7, %v341_v10, %v337_v25  ;;  %vm350_vm15 = vweird.f32 %v893_v21  ;;  %vm1133_vm0 = vmor %vm379_vm9, %vm380_vm13 }
 0x11d   : > { %v1103_v31 = vpop.xlane.xlu0 %288  ;;  %v376_v36 = vsub.f32 1.0, %v375_v23  ;;  %v315_v37 = vmul.f32 %v1098_v27, %v1060_v2  ;;  %896 = vrcp.f32 %v1101_v30  ;;  %v312_v50 = vsel %vm1068_vm6, %v311_v13, %v307_v33  ;;  %vm1152_vm5 = vmor %vm349_vm10, %vm350_vm15 }
 0x11e   : > { %v346_v39 = vsub.f32 1.0, %v345_v28  ;;  %898 = vrcp.f32 %v1103_v31  ;;  %v343_v53 = vmul.f32 %v1020_v32, %v342_v38  ;;  %v313_v57 = vmul.f32 %v1022_v34, %v312_v50 }
 0x11f   : > { %v377_v43 = vmul.f32 %v1076_v17, %v376_v36  ;;  %v316_v45 = vsub.f32 1.0, %v315_v37  ;;  %vm320_vm3 = vweird.f32 %v1098_v27  ;;  %vm394_vm6 = vweird.f32 %v1101_v30 }
 0x120   : > { %v347_v49 = vmul.f32 %v893_v21, %v346_v39  ;;  %v425_v32 = vmul.f32 %v1120_v40, %v343_v53  ;;  %v400_v63 = vand.u32 2147483648, %v1101_v30  ;;  %v423_v0 = vmul.f32 %v1120_v40, %v313_v57  ;;  %vm321_vm7 = vmor %vm319_vm12, %vm320_vm3 }
 0x121   : > { %v317_v56 = vmul.f32 %v1098_v27, %v316_v45  ;;  %v378_v58 = vadd.f32 %v1076_v17, %v377_v43  ;;  %v370_v10 = vand.u32 2147483648, %v1103_v31  ;;  %v398_v14 = vand.u32 2147483647, %v1101_v30 }
 0x122   : > { %v348_v60 = vadd.f32 %v893_v21, %v347_v49  ;;  %v437_v6 = vsel %vm226_vm1, %v425_v32, 0.0  ;;  %v431_v11 = vsel %vm226_vm1, %v423_v0, 0.0  ;;  %v368_v15 = vand.u32 2147483647, %v1103_v31 }
 0x123   : > { %v897_v62 = vpop.eup %896  ;;  %v318_v3 = vadd.f32 %v1098_v27, %v317_v56  ;;  %v382_v8 = vsel %vm1133_vm0, %v1076_v17, %v378_v58  ;;  %438 = vadd.xlane.f32.xlu0 %v437_v6  ;;  %432 = vadd.xlane.f32.xlu1 %v431_v11  ;;  %vm364_vm10 = vweird.f32 %v1103_v31  ;;  %vm399_vm13 = vcmp.eq.f32.partialorder %v398_v14, 8.507059e+37  ;;  %v465_v6 = vld [vmem:[%s1001_s21 + $0x10] sm:$0xff] }
 0x124   : > { %v899_v4 = vpop.eup %898  ;;  %v390_v5 = vmul.f32 %v897_v62, %v1101_v30  ;;  %v352_v1 = vsel %vm1152_vm5, %v893_v21, %v348_v60  ;;  %v387_v18 = vsel %vm1140_vm2, %v1083_v19, %v382_v8  ;;  %vm395_vm8 = vweird.f32 %v897_v62 }
 0x125   : > { %v1162_v7 = vpop.xlane.xlu0 %297  ;;  %v360_v9 = vmul.f32 %v899_v4, %v1103_v31  ;;  %v357_v13 = vsel %vm1124_vm14, %v356_v29, %v352_v1  ;;  %v322_v20 = vsel %vm321_vm7, %v1098_v27, %v318_v3  ;;  %v388_v21 = vmul.f32 %v1028_v42, %v387_v18  ;;  %vm396_vm11 = vmor %vm394_vm6, %vm395_vm8 }
 0x126   : > { %900 = vrcp.f32 %v1162_v7  ;;  %v391_v12 = vsub.f32 1.0, %v390_v5  ;;  %v358_v17 = vmul.f32 %v1030_v44, %v357_v13  ;;  %v327_v22 = vsel %vm1146_vm4, %v326_v46, %v322_v20 }
 0x127   : > { %v361_v16 = vsub.f32 1.0, %v360_v9  ;;  %vm365_vm9 = vweird.f32 %v899_v4  ;;  %v328_v25 = vmul.f32 %v1034_v47, %v327_v22  ;;  %v401_v44 = vor.u32 1.1754944e-38, %v400_v63  ;;  %v468_v22 = vld [vmem:[%s1001_s21 + $0x28] sm:$0xff] }
 0x128   : > { %v392_v2 = vmul.f32 %v897_v62, %v391_v12  ;;  %v426_v24 = vmul.f32 %v1120_v40, %v358_v17  ;;  %v428_v19 = vmul.f32 %v1120_v40, %v388_v21  ;;  %v371_v42 = vor.u32 1.1754944e-38, %v370_v10  ;;  %vm366_vm12 = vmor %vm364_vm10, %vm365_vm9  ;;  %v466_v10 = vld [vmem:[%s1001_s21 + $0x18] sm:$0xff] }
 0x129   : > { %v362_v23 = vmul.f32 %v899_v4, %v361_v16  ;;  %v424_v29 = vmul.f32 %v1120_v40, %v328_v25  ;;  %vm369_vm14 = vcmp.eq.f32.partialorder %v368_v15, 8.507059e+37  ;;  %v415_v43 = vand.u32 2147483648, %v1162_v7 }
 0x12a   : > { %v393_v26 = vadd.f32 %v897_v62, %v392_v2  ;;  %v440_v28 = vsel %vm226_vm1, %v426_v24, 0.0  ;;  %v446_v47 = vsel %vm226_vm1, %v428_v19, 0.0  ;;  %v413_v49 = vand.u32 2147483647, %v1162_v7  ;;  %v467_v24 = vld [vmem:[%s1001_s21 + $0x20] sm:$0xff] }
 0x12b   : > { %v363_v33 = vadd.f32 %v899_v4, %v362_v23  ;;  %447 = vadd.xlane.f32.xlu0 %v446_v47  ;;  %v434_v31 = vsel %vm226_vm1, %v424_v29, 0.0  ;;  %441 = vadd.xlane.f32.xlu1 %v440_v28  ;;  %vm409_vm0 = vweird.f32 %v1162_v7  ;;  %v416_v54 = vor.u32 1.1754944e-38, %v415_v43  ;;  %v469_v23 = vld [vmem:[%s1001_s21 + $0x30] sm:$0xff] }
 0x12c   : > { %v901_v27 = vpop.eup %900  ;;  %v397_v36 = vsel %vm396_vm11, %v897_v62, %v393_v26  ;;  %435 = vadd.xlane.f32.xlu2 %v434_v31  ;;  %vm414_vm3 = vcmp.eq.f32.partialorder %v413_v49, 8.507059e+37  ;;  %v192_v60 = vlaneseq  ;;  %v201_v62 = vstv %s835_s24 }
 0x12d   : > { %v405_v35 = vmul.f32 %v901_v27, %v1162_v7  ;;  %v402_v37 = vsel %vm399_vm13, %v401_v44, %v397_v36  ;;  %v367_v38 = vsel %vm366_vm12, %v899_v4, %v363_v33  ;;  %vm410_vm15 = vweird.f32 %v901_v27  ;;  %v463_v4 = vld [vmem:[%s1001_s21] sm:$0xff]  ;;  %v464_v7 = vld [vmem:[%s1001_s21 + $0x8] sm:$0xff]  ;;  %v470_v36 = vld [vmem:[%s1001_s21 + $0x38] sm:$0xff] }
 0x12e   : > { %v403_v39 = vmul.f32 %v1042_v52, %v402_v37  ;;  %v372_v41 = vsel %vm369_vm14, %v371_v42, %v367_v38  ;;  %vm411_vm2 = vmor %vm409_vm0, %vm410_vm15  ;;  %v193_v61 = vshrl.u32 %v192_v60, 7  ;;  %vm480_vm5 = vcmask 7168  }
 0x12f   : > { %v406_v30 = vsub.f32 1.0, %v405_v35  ;;  %v373_v45 = vmul.f32 %v1040_v51, %v372_v41  ;;  %vm507_vm12 = vcmask 0  }
 0x130   : > { %v429_v48 = vmul.f32 %v1120_v40, %v403_v39  ;;  %v195_v34 = vadd.s32 16, %v193_v61  ;;  %v1213_v63 = vadd.s32 %v201_v62, %v193_v61  ;;  %v196_v0 = vadd.s32 24, %v193_v61 }
 0x131   : > { %v407_v46 = vmul.f32 %v901_v27, %v406_v30  ;;  %v427_v50 = vmul.f32 %v1120_v40, %v373_v45  ;;  %v198_v5 = vadd.s32 40, %v193_v61  ;;  %v199_v14 = vadd.s32 48, %v193_v61 }
 0x132   : > { %v449_v52 = vsel %vm226_vm1, %v429_v48, 0.0  ;;  %v1215_v3 = vadd.s32 %v201_v62, %v195_v34  ;;  %vm210_vm4 = vcmp.lt.s32.totalorder %v1213_v63, 200  ;;  %v197_v17 = vadd.s32 32, %v193_v61 }
 0x133   : > { %v408_v53 = vadd.f32 %v901_v27, %v407_v46  ;;  %v443_v56 = vsel %vm226_vm1, %v427_v50, 0.0  ;;  %450 = vadd.xlane.f32.xlu1 %v449_v52  ;;  %v471_v8 = vsel %vm210_vm4, %v463_v4, 0.0  ;;  %v1229_v11 = vadd.s32 %v201_v62, %v198_v5 }
 0x134   : > { %444 = vadd.xlane.f32.xlu2 %v443_v56  ;;  %v510_v9 = vsel %vm480_vm5, %v471_v8, 0.0  ;;  %v1240_v2 = vadd.s32 %v201_v62, %v199_v14  ;;  %v1248_v25 = vadd.s32 %v201_v62, %v197_v17  ;;  %v200_v33 = vadd.s32 56, %v193_v61 }
 0x135   : > { %v412_v57 = vsel %vm411_vm2, %v901_v27, %v408_v53  ;;  %vm215_vm8 = vcmp.lt.s32.totalorder %v1229_v11, 200  ;;  %v574_v41 = vmul.f32 %v471_v8, %v471_v8 }
 0x136   : > { %v417_v51 = vsel %vm414_vm3, %v416_v54, %v412_v57  ;;  %vm216_vm9 = vcmp.lt.s32.totalorder %v1240_v2, 200  ;;  %vm214_vm10 = vcmp.lt.s32.totalorder %v1248_v25, 200  ;;  %v1254_v19 = vsel %vm215_vm8, %v468_v22, 0.0 }
 0x137   : > { %v418_v58 = vmul.f32 %v1048_v55, %v417_v51  ;;  %v1219_v55 = vadd.s32 %v201_v62, %v196_v0  ;;  %v1258_v26 = vsel %vm216_vm9, %v469_v23, 0.0  ;;  %v1262_v27 = vsel %vm214_vm10, %v467_v24, 0.0 }
 0x138   : > { %v519_v28 = vsel %vm480_vm5, %v1254_v19, 0.0  ;;  %v517_v29 = vsel %vm480_vm5, %v1262_v27, 0.0  ;;  %v1268_v47 = vadd.s32 %v201_v62, %v200_v33  ;;  %v521_v31 = vsel %vm480_vm5, %v1258_v26, 0.0 }
 0x139   : > { %v430_v59 = vmul.f32 %v1120_v40, %v418_v58  ;;  %v194_v40 = vadd.s32 8, %v193_v61  ;;  %vm213_vm6 = vcmp.lt.s32.totalorder %v1219_v55, 200  ;;  %v582_v49 = vsel %vm480_vm5, %v574_v41, 0.0 }
 0x13a   : > { %v1238_v18 = vsel %vm213_vm6, %v466_v10, 0.0  ;;  %vm217_vm11 = vcmp.lt.s32.totalorder %v1268_v47, 200  ;;  %v578_v14 = vmul.f32 %v1262_v27, %v1262_v27  ;;  %v579_v24 = vmul.f32 %v1254_v19, %v1254_v19 }
 0x13b   : > { %v452_v32 = vsel %vm226_vm1, %v430_v59, 0.0  ;;  %vm212_vm1 = vcmp.lt.s32.totalorder %v1215_v3, 200  ;;  %v203_v1 = vadd.s32 %v201_v62, %v194_v40  ;;  %v515_v21 = vsel %vm480_vm5, %v1238_v18, 0.0 }
 0x13c   : > { %453 = vadd.xlane.f32.xlu2 %v452_v32  ;;  %v473_v12 = vsel %vm212_vm1, %v465_v6, 0.0  ;;  %v1276_v38 = vsel %vm217_vm11, %v470_v36, 0.0  ;;  %v577_v52 = vmul.f32 %v1238_v18, %v1238_v18 }
 0x13d   : > { %vm211_vm7 = vcmp.lt.s32.totalorder %v203_v1, 200  ;;  %v513_v15 = vsel %vm480_vm5, %v473_v12, 0.0  ;;  %v523_v39 = vsel %vm480_vm5, %v1276_v38, 0.0  ;;  %v576_v50 = vmul.f32 %v473_v12, %v473_v12 }
 0x13e   : > { %v472_v13 = vsel %vm211_vm7, %v464_v7, 0.0  ;;  %v587_v61 = vsel %vm480_vm5, %v577_v52, 0.0 }
 0x13f   : > { %v511_v16 = vsel %vm480_vm5, %v472_v13, 0.0  ;;  %v575_v43 = vmul.f32 %v472_v13, %v472_v13  ;;  %v585_v57 = vsel %vm480_vm5, %v576_v50, 0.0 }
 0x140   : > { %v512_v20 = vadd.f32 %v511_v16, %v510_v9 }
 0x141   : > { %v583_v53 = vsel %vm480_vm5, %v575_v43, 0.0 }
 0x142   : > { %v514_v44 = vadd.f32 %v513_v15, %v512_v20  ;;  %v584_v56 = vadd.f32 %v583_v53, %v582_v49 }
 0x144   : > { %v516_v42 = vadd.f32 %v515_v21, %v514_v44  ;;  %v586_v34 = vadd.f32 %v585_v57, %v584_v56  ;;  %v580_v44 = vmul.f32 %v1258_v26, %v1258_v26 }
 0x146   : > { %v518_v35 = vadd.f32 %v517_v29, %v516_v42 }
 0x148   : > { %v520_v37 = vadd.f32 %v519_v28, %v518_v35  ;;  %v588_v35 = vadd.f32 %v587_v61, %v586_v34 }
 0x14a   : > { %v522_v30 = vadd.f32 %v521_v31, %v520_v37  ;;  %v589_v37 = vsel %vm480_vm5, %v578_v14, 0.0 }
 0x14c   : > { %v524_v45 = vadd.f32 %v523_v39, %v522_v30 }
 0x14e   : > { %525 = vadd.xlane.f32.xlu1 %v524_v45 }
 0x196   : > { %v433_v46 = vpop.xlane.xlu1 %432  ;;  %v439_v48 = vpop.xlane.xlu0 %438 }
 0x197   : > { %v455_v54 = vsel %vm210_vm4, %v433_v46, 0.0  ;;  %v457_v51 = vsel %vm212_vm1, %v439_v48, 0.0 }
 0x198   : > { %v538_v58 = vmul.f32 %v455_v54, %v455_v54  ;;  %v610_v59 = vmul.f32 %v471_v8, %v455_v54  ;;  %v481_v63 = vsel %vm480_vm5, %v455_v54, 0.0  ;;  %v540_v0 = vmul.f32 %v457_v51, %v457_v51 }
 0x199   : > { %v612_v4 = vmul.f32 %v473_v12, %v457_v51  ;;  %v484_v1 = vsel %vm480_vm5, %v457_v51, 0.0  ;;  %v590_v54 = vadd.f32 %v589_v37, %v588_v35 }
 0x19a   : > { %v546_v9 = vsel %vm480_vm5, %v538_v58, 0.0  ;;  %v618_v10 = vsel %vm480_vm5, %v610_v59, 0.0  ;;  %v549_v22 = vsel %vm480_vm5, %v540_v0, 0.0 }
 0x19b   : > { %v621_v23 = vsel %vm480_vm5, %v612_v4, 0.0 }
 0x19e   : > { %v442_v32 = vpop.xlane.xlu1 %441  ;;  %v448_v5 = vpop.xlane.xlu0 %447 }
 0x19f   : > { %v436_v60 = vpop.xlane.xlu2 %435  ;;  %v458_v3 = vsel %vm213_vm6, %v442_v32, 0.0  ;;  %v460_v55 = vsel %vm215_vm8, %v448_v5, 0.0 }
 0x1a0   : > { %v456_v62 = vsel %vm211_vm7, %v436_v60, 0.0  ;;  %v541_v17 = vmul.f32 %v458_v3, %v458_v3  ;;  %v486_v42 = vsel %vm480_vm5, %v458_v3, 0.0  ;;  %v615_v45 = vmul.f32 %v1254_v19, %v460_v55 }
 0x1a1   : > { %v482_v40 = vsel %vm480_vm5, %v456_v62, 0.0  ;;  %v539_v7 = vmul.f32 %v456_v62, %v456_v62  ;;  %v611_v8 = vmul.f32 %v472_v13, %v456_v62  ;;  %v613_v13 = vmul.f32 %v1238_v18, %v458_v3 }
 0x1a2   : > { %v483_v6 = vadd.f32 %v482_v40, %v481_v63  ;;  %v543_v18 = vmul.f32 %v460_v55, %v460_v55  ;;  %v551_v30 = vsel %vm480_vm5, %v541_v17, 0.0  ;;  %v490_v25 = vsel %vm480_vm5, %v460_v55, 0.0 }
 0x1a3   : > { %v547_v12 = vsel %vm480_vm5, %v539_v7, 0.0  ;;  %v619_v16 = vsel %vm480_vm5, %v611_v8, 0.0  ;;  %v623_v39 = vsel %vm480_vm5, %v613_v13, 0.0  ;;  %v591_v19 = vsel %vm480_vm5, %v579_v24, 0.0 }
 0x1a4   : > { %v485_v15 = vadd.f32 %v484_v1, %v483_v6  ;;  %v548_v20 = vadd.f32 %v547_v12, %v546_v9  ;;  %v620_v21 = vadd.f32 %v619_v16, %v618_v10  ;;  %v555_v32 = vsel %vm480_vm5, %v543_v18, 0.0 }
 0x1a5   : > { %v581_v60 = vmul.f32 %v1276_v38, %v1276_v38  ;;  %v593_v63 = vsel %vm480_vm5, %v580_v44, 0.0  ;;  %v592_v5 = vadd.f32 %v591_v19, %v590_v54 }
 0x1a6   : > { %v550_v28 = vadd.f32 %v549_v22, %v548_v20  ;;  %v622_v11 = vadd.f32 %v621_v23, %v620_v21  ;;  %v451_v29 = vpop.xlane.xlu1 %450  ;;  %v487_v31 = vadd.f32 %v486_v42, %v485_v15 }
 0x1a7   : > { %v445_v33 = vpop.xlane.xlu2 %444  ;;  %v461_v41 = vsel %vm216_vm9, %v451_v29, 0.0  ;;  %v594_v16 = vadd.f32 %v593_v63, %v592_v5  ;;  %v595_v55 = vsel %vm480_vm5, %v581_v60, 0.0  ;;  %v609_v63 = vld [vmem:[#allocation6] sm:$0x1] }
 0x1a8   : > { %v459_v36 = vsel %vm214_vm10, %v445_v33, 0.0  ;;  %v552_v50 = vadd.f32 %v551_v30, %v550_v28  ;;  %v624_v53 = vadd.f32 %v623_v39, %v622_v11  ;;  %v616_v52 = vmul.f32 %v1258_v26, %v461_v41 }
 0x1a9   : > { %v488_v43 = vsel %vm480_vm5, %v459_v36, 0.0  ;;  %v542_v48 = vmul.f32 %v459_v36, %v459_v36  ;;  %v614_v49 = vmul.f32 %v1262_v27, %v459_v36  ;;  %v544_v51 = vmul.f32 %v461_v41, %v461_v41 }
 0x1aa   : > { %v489_v46 = vadd.f32 %v488_v43, %v487_v31  ;;  %v627_v27 = vsel %vm480_vm5, %v615_v45, 0.0  ;;  %v492_v61 = vsel %vm480_vm5, %v461_v41, 0.0  ;;  %v629_v40 = vsel %vm480_vm5, %v616_v52, 0.0 }
 0x1ab   : > { %v553_v56 = vsel %vm480_vm5, %v542_v48, 0.0  ;;  %v625_v2 = vsel %vm480_vm5, %v614_v49, 0.0  ;;  %v557_v8 = vsel %vm480_vm5, %v544_v51, 0.0 }
 0x1ac   : > { %v491_v57 = vadd.f32 %v490_v25, %v489_v46  ;;  %v554_v58 = vadd.f32 %v553_v56, %v552_v50  ;;  %v626_v59 = vadd.f32 %v625_v2, %v624_v53 }
 0x1ae   : > { %v628_v62 = vadd.f32 %v627_v27, %v626_v59  ;;  %v556_v34 = vadd.f32 %v555_v32, %v554_v58  ;;  %v493_v4 = vadd.f32 %v492_v61, %v491_v57  ;;  %v479_v58 = vld [vmem:[#allocation2] sm:$0x1]  ;;  %v509_v59 = vld [vmem:[#allocation3] sm:$0x1]  ;;  %v537_v32 = vld [vmem:[#allocation4] sm:$0x1] }
 0x1af   : > { %v454_v26 = vpop.xlane.xlu2 %453 }
 0x1b0   : > { %v462_v0 = vsel %vm217_vm11, %v454_v26, 0.0  ;;  %v630_v10 = vadd.f32 %v629_v40, %v628_v62  ;;  %v558_v1 = vadd.f32 %v557_v8, %v556_v34  ;;  %v573_v34 = vld [vmem:[#allocation5] sm:$0x1] }
 0x1b1   : > { %v545_v3 = vmul.f32 %v462_v0, %v462_v0  ;;  %v617_v6 = vmul.f32 %v1276_v38, %v462_v0  ;;  %v494_v7 = vsel %vm480_vm5, %v462_v0, 0.0  ;;  %v596_v38 = vadd.f32 %v595_v55, %v594_v16 }
 0x1b2   : > { %v495_v9 = vadd.f32 %v494_v7, %v493_v4 }
 0x1b3   : > { %v631_v14 = vsel %vm480_vm5, %v617_v6, 0.0  ;;  %v559_v15 = vsel %vm480_vm5, %v545_v3, 0.0 }
 0x1b4   : > { %496 = vadd.xlane.f32.xlu0 %v495_v9  ;;  %v632_v47 = vadd.f32 %v631_v14, %v630_v10  ;;  %v560_v12 = vadd.f32 %v559_v15, %v558_v1 }
 0x1b6   : > { %633 = vadd.xlane.f32.xlu1 %v632_v47  ;;  %561 = vadd.xlane.f32.xlu2 %v560_v12 }
 0x1bc   : > { %597 = vadd.xlane.f32.xlu0 %v596_v38 }
 0x1c1   : > { %v526_v17 = vpop.xlane.xlu1 %525 }
 0x1c2   : > { %v527_v13 = vrot.slane %v526_v17, 4 }
 0x1c4   : > { %v528_v20 = vadd.f32 %v527_v13, %v526_v17 }
 0x1c6   : > { %v529_v21 = vrot.slane %v528_v20, 2 }
 0x1c8   : > { %v530_v29 = vadd.f32 %v529_v21, %v528_v20 }
 0x1ca   : > { %v531_v39 = vrot.slane %v530_v29, 1 }
 0x1cc   : > { %v532_v50 = vadd.f32 %v531_v39, %v530_v29 }
 0x227   : > { %v497_v22 = vpop.xlane.xlu0 %496 }
 0x228   : > { %v498_v23 = vrot.slane %v497_v22, 4 }
 0x229   : > { %v634_v24 = vpop.xlane.xlu1 %633  ;;  %v562_v44 = vpop.xlane.xlu2 %561 }
 0x22a   : > { %v499_v42 = vadd.f32 %v498_v23, %v497_v22  ;;  %v635_v28 = vrot.slane %v634_v24, 4  ;;  %v563_v11 = vrot.slane %v562_v44, 4 }
 0x22c   : > { %v500_v33 = vrot.slane %v499_v42, 2  ;;  %v636_v35 = vadd.f32 %v635_v28, %v634_v24  ;;  %v564_v18 = vadd.f32 %v563_v11, %v562_v44 }
 0x22e   : > { %v565_v36 = vrot.slane %v564_v18, 2  ;;  %v501_v31 = vadd.f32 %v500_v33, %v499_v42  ;;  %v637_v37 = vrot.slane %v636_v35, 2 }
 0x22f   : > { %v598_v30 = vpop.xlane.xlu0 %597 }
 0x230   : > { %v566_v41 = vadd.f32 %v565_v36, %v564_v18  ;;  %v599_v43 = vrot.slane %v598_v30, 4  ;;  %v502_v45 = vrot.slane %v501_v31, 1  ;;  %v638_v25 = vadd.f32 %v637_v37, %v636_v35 }
 0x232   : > { %v600_v46 = vadd.f32 %v599_v43, %v598_v30  ;;  %v503_v48 = vadd.f32 %v502_v45, %v501_v31  ;;  %v567_v49 = vrot.slane %v566_v41, 1  ;;  %v639_v56 = vrot.slane %v638_v25, 1 }
 0x234   : > { %v601_v53 = vrot.slane %v600_v46, 2  ;;  %841 = vpush %v503_v48  ;;  %v568_v54 = vadd.f32 %v567_v49, %v566_v41  ;;  %v640_v51 = vadd.f32 %v639_v56, %v638_v25 }
 0x235   : > { %843 = vpush %v532_v50 }
 0x236   : > { %v602_v52 = vadd.f32 %v601_v53, %v600_v46  ;;  %845 = vpush %v568_v54 }
 0x238   : > { %v603_v2 = vrot.slane %v602_v52, 1 }
 0x23a   : > { %v604_v57 = vadd.f32 %v603_v2, %v602_v52 }
 0x23c   : > { %847 = vpush %v604_v57 }
 0x23d   : > { %849 = vpush %v640_v51 }
 0x265   : > { %s842_s25 = spop %841 }
 0x266   : > { %v505_v19 = vstv %s842_s25  ;;  %s844_s26 = spop %843 }
 0x267   : > { %v506_v27 = vadd.f32 %v505_v19, %v479_v58  ;;  %v534_v60 = vstv %s844_s26  ;;  %s846_s27 = spop %845 }
 0x268   : > { %v535_v61 = vadd.f32 %v534_v60, %v509_v59  ;;  %v570_v26 = vstv %s846_s27 }
 0x269   : > { %508 = vst.msk [vmem:[#allocation2] sm:$0x1] %vm507_vm12, %v506_v27  ;;  %v571_v62 = vadd.f32 %v570_v26, %v537_v32 }
 0x26a   : > { %536 = vst.msk [vmem:[#allocation3] sm:$0x1] %vm507_vm12, %v535_v61 }
 0x26b   : > { %572 = vst.msk [vmem:[#allocation4] sm:$0x1] %vm507_vm12, %v571_v62 }
 0x26d   : > { %s848_s28 = spop %847 }
 0x26e   : > { %v606_v0 = vstv %s848_s28  ;;  %s850_s29 = spop %849  ;;  %648 = sbr.rel (%p836_p5) target bundleno = 704 (0x2c0), region = 40 }
 0x26f   : > { %v607_v4 = vadd.f32 %v606_v0, %v573_v34  ;;  %v642_v40 = vstv %s850_s29 }
 0x270   : > { %v643_v5 = vadd.f32 %v642_v40, %v609_v63 }
 0x271   : > { %608 = vst.msk [vmem:[#allocation5] sm:$0x1] %vm507_vm12, %v607_v4 }
 0x272   : > { %644 = vst.msk [vmem:[#allocation6] sm:$0x1] %vm507_vm12, %v643_v5 }
 0x273   : > { %v959_v3 = vmov 200.0   ;;  %v960_v6 = vmov 199.0   ;;  %v1348_v47 = vld [vmem:[#allocation2] sm:$0x1]  ;;  %v650_v12 = vld [vmem:[#allocation3] sm:$0x1] }
 0x274   : > { %902 = vrcp.f32 %v959_v3  ;;  %v651_v20 = vld [vmem:[#allocation4] sm:$0x1] }
 0x275   : > { %904 = vrcp.f32 %v960_v6 }
 0x278   : > { %v652_v21 = vld [vmem:[#allocation5] sm:$0x1] }
 0x27a   : > { %v903_v7 = vpop.eup %902 }
 0x27b   : > { %v905_v8 = vpop.eup %904  ;;  %v655_v9 = vmul.f32 200.0, %v903_v7  ;;  %vm659_vm13 = vweird.f32 %v903_v7 }
 0x27c   : > { %v710_v10 = vmul.f32 199.0, %v905_v8  ;;  %vm714_vm14 = vweird.f32 %v905_v8 }
 0x27d   : > { %v656_v1 = vsub.f32 1.0, %v655_v9 }
 0x27e   : > { %v711_v14 = vsub.f32 1.0, %v710_v10 }
 0x27f   : > { %v657_v15 = vmul.f32 %v903_v7, %v656_v1  ;;  %v653_v1 = vld [vmem:[#allocation6] sm:$0x1] }
 0x280   : > { %v712_v55 = vmul.f32 %v905_v8, %v711_v14 }
 0x281   : > { %v658_v16 = vadd.f32 %v903_v7, %v657_v15 }
 0x282   : > { %v713_v22 = vadd.f32 %v905_v8, %v712_v55 }
 0x283   : > { %v660_v38 = vsel %vm659_vm13, %v903_v7, %v658_v16 }
 0x284   : > { %v661_v17 = vmul.f32 %v660_v38, %v1348_v47  ;;  %v1351_v13 = vmul.f32 %v660_v38, %v650_v12  ;;  %v715_v28 = vsel %vm714_vm14, %v905_v8, %v713_v22 }
 0x286   : > { %v663_v23 = vmul.f32 %v661_v17, %v1348_v47  ;;  %v665_v24 = vmul.f32 %v1351_v13, %v650_v12  ;;  %v746_v35 = vsub.f32 %v661_v17, %v1351_v13  ;;  %v667_v8 = vmul.f32 %v1351_v13, %v1348_v47 }
 0x288   : > { %v664_v44 = vsub.f32 %v651_v20, %v663_v23  ;;  %v666_v42 = vsub.f32 %v652_v21, %v665_v24  ;;  %v747_v41 = vmul.f32 %v746_v35, %v746_v35  ;;  %v668_v38 = vsub.f32 %v653_v1, %v667_v8 }
 0x28a   : > { %906 = vrsqrt.f32 %v664_v44  ;;  %v1355_v11 = vmul.f32 %v715_v28, %v664_v44  ;;  %v1357_v29 = vmul.f32 %v715_v28, %v666_v42  ;;  %vm676_vm15 = vcmp.eq.f32.partialorder %v664_v44, inf }
 0x28b   : > { %908 = vrsqrt.f32 %v666_v42  ;;  %v679_v52 = vand.u32 2147483648, %v664_v44  ;;  %vm678_vm0 = vcmp.eq.f32.partialorder %v664_v44, 0.0  ;;  %vm688_vm2 = vcmp.eq.f32.partialorder %v666_v42, inf }
 0x28c   : > { %910 = vrsqrt.f32 %v1355_v11  ;;  %v745_v39 = vadd.f32 %v1357_v29, %v1355_v11  ;;  %v691_v51 = vand.u32 2147483648, %v666_v42  ;;  %vm690_vm3 = vcmp.eq.f32.partialorder %v666_v42, 0.0 }
 0x28d   : > { %912 = vrsqrt.f32 %v1357_v29  ;;  %vm725_vm6 = vcmp.eq.f32.partialorder %v1355_v11, inf  ;;  %vm727_vm10 = vcmp.eq.f32.partialorder %v1355_v11, 0.0  ;;  %v728_v21 = vand.u32 2147483648, %v1355_v11 }
 0x28e   : > { %v1364_v50 = vadd.f32 %v747_v41, %v745_v39  ;;  %vm737_vm11 = vcmp.eq.f32.partialorder %v1357_v29, inf  ;;  %vm739_vm14 = vcmp.eq.f32.partialorder %v1357_v29, 0.0 }
 0x290   : > { %v907_v33 = vpop.eup %906  ;;  %914 = vrcp.f32 %v1364_v50  ;;  %vm754_vm7 = vweird.f32 %v1364_v50  ;;  %v760_v22 = vand.u32 2147483648, %v1364_v50 }
 0x291   : > { %v909_v18 = vpop.eup %908  ;;  %v670_v36 = vmul.f32 %v907_v33, %v664_v44 }
 0x292   : > { %v682_v31 = vmul.f32 %v909_v18, %v666_v42  ;;  %v911_v45 = vpop.eup %910 }
 0x293   : > { %v671_v37 = vmul.f32 %v907_v33, %v670_v36  ;;  %v913_v48 = vpop.eup %912  ;;  %v719_v54 = vmul.f32 %v911_v45, %v1355_v11 }
 0x294   : > { %v683_v30 = vmul.f32 %v909_v18, %v682_v31  ;;  %v731_v2 = vmul.f32 %v913_v48, %v1357_v29  ;;  %v761_v31 = vor.u32 1.1754944e-38, %v760_v22 }
 0x295   : > { %v672_v43 = vmul.f32 0.5, %v671_v37  ;;  %v720_v19 = vmul.f32 %v911_v45, %v719_v54 }
 0x296   : > { %v684_v46 = vmul.f32 0.5, %v683_v30  ;;  %v732_v60 = vmul.f32 %v913_v48, %v731_v2  ;;  %v915_v34 = vpop.eup %914 }
 0x297   : > { %v673_v49 = vsub.f32 1.5, %v672_v43  ;;  %v721_v62 = vmul.f32 0.5, %v720_v19  ;;  %v750_v4 = vmul.f32 %v915_v34, %v1364_v50  ;;  %vm755_vm9 = vweird.f32 %v915_v34 }
 0x298   : > { %v685_v25 = vsub.f32 1.5, %v684_v46  ;;  %v733_v63 = vmul.f32 0.5, %v732_v60  ;;  %vm756_vm13 = vmor %vm754_vm7, %vm755_vm9 }
 0x299   : > { %v674_v53 = vmul.f32 %v907_v33, %v673_v49  ;;  %v722_v0 = vsub.f32 1.5, %v721_v62  ;;  %v751_v7 = vsub.f32 1.0, %v750_v4  ;;  %v740_v33 = vand.u32 2147483648, %v1357_v29 }
 0x29a   : > { %v686_v56 = vmul.f32 %v909_v18, %v685_v25  ;;  %v734_v40 = vsub.f32 1.5, %v733_v63 }
 0x29b   : > { %v675_v57 = vmul.f32 %v674_v53, %v664_v44  ;;  %v723_v6 = vmul.f32 %v911_v45, %v722_v0  ;;  %v752_v55 = vmul.f32 %v915_v34, %v751_v7 }
 0x29c   : > { %v687_v58 = vmul.f32 %v686_v56, %v666_v42  ;;  %v735_v10 = vmul.f32 %v913_v48, %v734_v40 }
 0x29d   : > { %v677_v59 = vsel %vm676_vm15, %v664_v44, %v675_v57  ;;  %v724_v16 = vmul.f32 %v723_v6, %v1355_v11  ;;  %v753_v44 = vadd.f32 %v915_v34, %v752_v55 }
 0x29e   : > { %v680_v32 = vsel %vm678_vm0, %v679_v52, %v677_v59  ;;  %v689_v27 = vsel %vm688_vm2, %v666_v42, %v687_v58  ;;  %v736_v13 = vmul.f32 %v735_v10, %v1357_v29  ;;  %v758_v42 = vand.u32 2147483647, %v1364_v50 }
 0x29f   : > { %v692_v61 = vsel %vm690_vm3, %v691_v51, %v689_v27  ;;  %v726_v24 = vsel %vm725_vm6, %v1355_v11, %v724_v16  ;;  %v757_v30 = vsel %vm756_vm13, %v915_v34, %v753_v44 }
 0x2a0   : > { %v693_v26 = vmul.f32 %v692_v61, %v680_v32  ;;  %v738_v18 = vsel %vm737_vm11, %v1357_v29, %v736_v13  ;;  %v729_v36 = vsel %vm727_vm10, %v728_v21, %v726_v24  ;;  %vm759_vm15 = vcmp.eq.f32.partialorder %v758_v42, 8.507059e+37 }
 0x2a1   : > { %v741_v11 = vsel %vm739_vm14, %v740_v33, %v738_v18  ;;  %v762_v41 = vsel %vm759_vm15, %v761_v31, %v757_v30 }
 0x2a2   : > { %916 = vrcp.f32 %v693_v26  ;;  %v705_v9 = vand.u32 2147483648, %v693_v26  ;;  %vm699_vm4 = vweird.f32 %v693_v26  ;;  %v703_v15 = vand.u32 2147483647, %v693_v26 }
 0x2a4   : > { %v706_v20 = vor.u32 1.1754944e-38, %v705_v9  ;;  %vm704_vm8 = vcmp.eq.f32.partialorder %v703_v15, 8.507059e+37 }
 0x2a8   : > { %v917_v5 = vpop.eup %916 }
 0x2a9   : > { %v695_v3 = vmul.f32 %v917_v5, %v693_v26  ;;  %vm700_vm1 = vweird.f32 %v917_v5 }
 0x2aa   : > { %vm1373_vm5 = vmor %vm699_vm4, %vm700_vm1 }
 0x2ab   : > { %v696_v14 = vsub.f32 1.0, %v695_v3 }
 0x2ad   : > { %v697_v12 = vmul.f32 %v917_v5, %v696_v14 }
 0x2af   : > { %v698_v47 = vadd.f32 %v917_v5, %v697_v12 }
 0x2b1   : > { %v702_v23 = vsel %vm1373_vm5, %v917_v5, %v698_v47 }
 0x2b2   : > { %v707_v28 = vsel %vm704_vm8, %v706_v20, %v702_v23 }
 0x2b3   : > { %v708_v35 = vmul.f32 %v707_v28, %v668_v38 }
 0x2b5   : > { %v742_v37 = vmul.f32 2.0, %v708_v35 }
 0x2b7   : > { %v743_v39 = vmul.f32 %v742_v37, %v729_v36 }
 0x2b9   : > { %v744_v43 = vmul.f32 %v743_v39, %v741_v11 }
 0x2bb   : > { %v763_v45 = vmul.f32 %v762_v41, %v744_v43 }
 0x2bd   : > { %v764_v46 = vsub.f32 1.0, %v763_v45 }
 0x2bf   : > { %765 = vst.msk [vmem:[#allocation7] sm:$0x1] %vm507_vm12, %v764_v46 }
 0x2c0 PF: > { %p855_p6 = scmp.eq.s32.totalorder %s988_s13, 3  ;;  %s961_s30 = smov [#allocation7]  }
 0x2c1   : > { %s772_s4 = sshll.u32 %s961_s30, 4  ;;  %s774_s7 = sshll.u32 %s1404_s3, 4  ;;  %s773_s4 = int_to_ptr.vmem [resolvable:$true] %s772_s4  ;;  %s775_s7 = int_to_ptr.hbm [resolvable:$true] %s774_s7 }
 0x2c2   : > { %852 = dma.vmem_to_hbm [thread:$0]  (%p855_p6), %s773_s4, 16, %s775_s7, [#allocation8]  }
 0x2c3   : > { %951 = dma.done.wait (%p855_p6), [#allocation8], 16  }
 0x2c4   : > { %953 = vsyncadd (%p855_p6), [#allocation8], 4294967280 }
 0x2c5 PF: > { %s14_s12 = sadd.s32 1, %s956_s12  }
 0x2c6   : > { %p11_p7 = scmp.ge.s32.totalorder %s14_s12, 6  }
 0x2c8   :  { %13 = sbr.rel (!%p11_p7) target bundleno = 1 (0x1), region = 70 }
 0x2cd   :  { %788 = vsyncpa [#allocation8], 1 }
 0x2ce   :  { %790 = vsyncpa [#allocation8 + $0x1], 1 }

</bundles_post_ra>
